<compile_context>
chip_gen: v7x
topology: tpu7x:2x2x1
jax: 0.10.0
libtpu: 0.0.40
codegen_flags: <defaults>
</compile_context>

<pallas_src>
import math

import jax
import jax.numpy as jnp
from jax.experimental import pallas as pl
from jax.experimental.pallas import tpu as pltpu


def _erf(x):
    """Abramowitz & Stegun 7.1.26 erf approximation (|err| < 1.5e-7).

    Built only from exp/mul/add/where so it lowers cleanly in Mosaic; used for
    the exact (erf-based) GELU matching PyTorch nn.GELU() defaults.
    """
    a1, a2, a3, a4, a5 = (0.254829592, -0.284496736, 1.421413741,
                          -1.453152027, 1.061405429)
    p = 0.3275911
    z = jnp.abs(x)
    t = 1.0 / (1.0 + p * z)
    poly = t * (a1 + t * (a2 + t * (a3 + t * (a4 + t * a5))))
    e = 1.0 - poly * jnp.exp(-z * z)
    return jnp.where(x < 0, -e, e)


def _encoder_block_kernel(n_heads, eps):
    def kernel(x_ref, g_ref, bln_ref, wqkv_ref, bqkv_ref, wp_ref, bp_ref,
               w1_ref, b1_ref, w2_ref, b2_ref, o_ref, y_acc):
        x = x_ref[0]                                  # (T, C), native dtype
        T, C = x.shape
        D = C // n_heads
        scale = 1.0 / math.sqrt(D)

        gamma = g_ref[...].astype(jnp.float32)        # (1, C)
        beta = bln_ref[...].astype(jnp.float32)       # (1, C)

        def layer_norm(v):                            # v: (T, C) f32
            mu = jnp.mean(v, axis=-1, keepdims=True)
            cen = v - mu
            var = jnp.mean(cen * cen, axis=-1, keepdims=True)
            return cen * jax.lax.rsqrt(var + eps) * gamma + beta

        x_f32 = x.astype(jnp.float32)

        # ---------------- attention branch: a = proj(attn(ln(x))) ----------------
        xn = layer_norm(x_f32).astype(x.dtype)        # MXU inputs stay in native dtype
        qkv = (jnp.dot(xn, wqkv_ref[...], preferred_element_type=jnp.float32)
               + bqkv_ref[...].astype(jnp.float32))   # (T, 3C): fused q|k|v
        qkv_lo = qkv.astype(x.dtype)

        # Static unrolled loop over heads; each head's output lands directly in the
        # (T, C) VMEM scratch slab (no concatenate, no long live ranges).
        for h in range(n_heads):
            lo = h * D
            qh = qkv_lo[:, lo:lo + D]                  # (T, D)
            kh = qkv_lo[:, C + lo:C + lo + D]          # (T, D)
            vh = qkv_lo[:, 2 * C + lo:2 * C + lo + D]  # (T, D)

            # q @ k^T without materialising a transpose.
            s = jax.lax.dot_general(qh, kh, (((1,), (1,)), ((), ())),
                                    preferred_element_type=jnp.float32) * scale
            s = s - jnp.max(s, axis=-1, keepdims=True)
            p = jnp.exp(s)
            p = p * pl.reciprocal(jnp.sum(p, axis=-1, keepdims=True), approx=True)

            y_acc[:, lo:lo + D] = jnp.dot(p.astype(x.dtype), vh,
                                          preferred_element_type=jnp.float32)

        a = (jnp.dot(y_acc[...].astype(x.dtype), wp_ref[...],
                     preferred_element_type=jnp.float32)
             + bp_ref[...].astype(jnp.float32))
        x1 = x_f32 + a                                 # first residual

        # ---------------- MLP branch: x1 + fc2(gelu(fc1(ln(x1)))) ----------------
        xn2 = layer_norm(x1).astype(x.dtype)
        hdn = (jnp.dot(xn2, w1_ref[...], preferred_element_type=jnp.float32)
               + b1_ref[...].astype(jnp.float32))
        hdn = 0.5 * hdn * (1.0 + _erf(hdn * (1.0 / math.sqrt(2.0))))   # exact GELU
        m = (jnp.dot(hdn.astype(x.dtype), w2_ref[...],
                     preferred_element_type=jnp.float32)
             + b2_ref[...].astype(jnp.float32))

        o_ref[0] = (x1 + m).astype(o_ref.dtype)        # second residual

    return kernel


def encoder_block(x, params, n_heads, eps=1e-5):
    """x: (B, T, C). params: (in,out) weights, (1,out) biases, LN gamma/beta."""
    B, T, C = x.shape
    assert C % n_heads == 0
    H = params["w1"].shape[1]

    # Fuse the three projection weights/biases host-side: one (C, 3C) matmul in-kernel.
    wqkv = jnp.concatenate([params["wq"], params["wk"], params["wv"]], axis=1)
    bqkv = jnp.concatenate([params["bq"], params["bk"], params["bv"]], axis=1)

    def const_spec(shape):
        # Constant block index across the batch grid -> DMA'd once, resident in VMEM.
        return pl.BlockSpec(shape, lambda b: (0, 0))

    out = pl.pallas_call(
        _encoder_block_kernel(n_heads, eps),
        out_shape=jax.ShapeDtypeStruct((B, T, C), x.dtype),
        grid_spec=pltpu.PrefetchScalarGridSpec(
            num_scalar_prefetch=0,
            grid=(B,),
            in_specs=[
                pl.BlockSpec((1, T, C), lambda b: (b, 0, 0)),    # x
                const_spec((1, C)), const_spec((1, C)),          # LayerNorm gamma/beta
                const_spec((C, 3 * C)), const_spec((1, 3 * C)),  # fused qkv
                const_spec((C, C)), const_spec((1, C)),          # attn output proj
                const_spec((C, H)), const_spec((1, H)),          # mlp fc1
                const_spec((H, C)), const_spec((1, C)),          # mlp fc2
            ],
            out_specs=pl.BlockSpec((1, T, C), lambda b: (b, 0, 0)),
            scratch_shapes=[pltpu.VMEM((T, C), jnp.float32)],    # per-head output slab
        ),
        compiler_params=pltpu.CompilerParams(
            dimension_semantics=("parallel",),
            vmem_limit_bytes=32 * 1024 * 1024,
        ),
    )(x, params["ln_g"], params["ln_b"], wqkv, bqkv,
      params["wp"], params["bp"], params["w1"], params["b1"],
      params["w2"], params["b2"])
    return out


def _reference(x, params, n_heads, eps=1e-5):
    """Pure-JAX mirror of the PyTorch EncoderBlock forward."""
    B, T, C = x.shape
    D = C // n_heads

    def ln(v):
        mu = v.mean(-1, keepdims=True)
        var = ((v - mu) ** 2).mean(-1, keepdims=True)
        return (v - mu) / jnp.sqrt(var + eps) * params["ln_g"][0] + params["ln_b"][0]

    def lin(v, w, b):
        return v @ w + b[0]

    xn = ln(x)
    q = lin(xn, params["wq"], params["bq"]).reshape(B, T, n_heads, D).transpose(0, 2, 1, 3)
    k = lin(xn, params["wk"], params["bk"]).reshape(B, T, n_heads, D).transpose(0, 2, 1, 3)
    v = lin(xn, params["wv"], params["bv"]).reshape(B, T, n_heads, D).transpose(0, 2, 1, 3)
    att = jax.nn.softmax((q @ k.transpose(0, 1, 3, 2)) * (1.0 / math.sqrt(D)), axis=-1)
    y = (att @ v).transpose(0, 2, 1, 3).reshape(B, T, C)
    a = lin(y, params["wp"], params["bp"])
    x1 = x + a
    h = jax.nn.gelu(lin(ln(x1), params["w1"], params["b1"]), approximate=False)
    return x1 + lin(h, params["w2"], params["b2"])


def init_params(key, n_embd, mlp_hidden_times):
    """PyTorch-style init: Linear ~ U(+-1/sqrt(fan_in)); LayerNorm weight=1, bias=0."""
    hidden = mlp_hidden_times * n_embd
    keys = jax.random.split(key, 12)

    def linear(kw, kb, fan_in, fan_out):
        bound = 1.0 / math.sqrt(fan_in)
        w = jax.random.uniform(kw, (fan_in, fan_out), jnp.float32, -bound, bound)
        b = jax.random.uniform(kb, (1, fan_out), jnp.float32, -bound, bound)
        return w, b

    p = {}
    p["wq"], p["bq"] = linear(keys[0], keys[1], n_embd, n_embd)
    p["wk"], p["bk"] = linear(keys[2], keys[3], n_embd, n_embd)
    p["wv"], p["bv"] = linear(keys[4], keys[5], n_embd, n_embd)
    p["wp"], p["bp"] = linear(keys[6], keys[7], n_embd, n_embd)
    p["w1"], p["b1"] = linear(keys[8], keys[9], n_embd, hidden)
    p["w2"], p["b2"] = linear(keys[10], keys[11], hidden, n_embd)
    p["ln_g"] = jnp.ones((1, n_embd), jnp.float32)
    p["ln_b"] = jnp.zeros((1, n_embd), jnp.float32)
    return p


if __name__ == "__main__":
    B, T, C, n_heads, mlp_hidden_times = 2, 8, 32, 4, 4

    key = jax.random.PRNGKey(0)
    kx, kp = jax.random.split(key)
    x = jax.random.normal(kx, (B, T, C), jnp.float32)
    params = init_params(kp, C, mlp_hidden_times)

    out = encoder_block(x, params, n_heads)
    jax.block_until_ready(out)

    ref = _reference(x, params, n_heads)
    assert out.shape == (B, T, C)
    # Tolerance relaxed slightly for pl.reciprocal(approx=True) in the softmax.
    assert jnp.allclose(out, ref, atol=3e-3, rtol=3e-3), (
        "mismatch: max abs err = %g" % float(jnp.max(jnp.abs(out - ref))))

    print("KERNEL_OK")
</pallas_src>

<mosaic_0001>
module attributes {stable_mosaic.version = 11 : i64} {
  func.func @kernel(%arg0: i32, %arg1: memref<1x8x32xf32, #tpu.memory_space<vmem>>, %arg2: memref<1x32xf32, #tpu.memory_space<vmem>>, %arg3: memref<1x32xf32, #tpu.memory_space<vmem>>, %arg4: memref<32x96xf32, #tpu.memory_space<vmem>>, %arg5: memref<1x96xf32, #tpu.memory_space<vmem>>, %arg6: memref<32x32xf32, #tpu.memory_space<vmem>>, %arg7: memref<1x32xf32, #tpu.memory_space<vmem>>, %arg8: memref<32x128xf32, #tpu.memory_space<vmem>>, %arg9: memref<1x128xf32, #tpu.memory_space<vmem>>, %arg10: memref<128x32xf32, #tpu.memory_space<vmem>>, %arg11: memref<1x32xf32, #tpu.memory_space<vmem>>, %arg12: memref<1x8x32xf32, #tpu.memory_space<vmem>>, %arg13: memref<8x32xf32, #tpu.memory_space<vmem>>) attributes {dimension_semantics = [#tpu.dimension_semantics<parallel>], iteration_bounds = array<i64: 2>, scalar_prefetch = 0 : i64, scratch_operands = 1 : i64, tpu.core_type = #tpu.core_type<tc>, window_params = [{transform_indices = @transform_0, window_bounds = array<i64: 1, 8, 32>}, {pipeline_mode = #tpu.pipeline_mode<synchronous>, transform_indices = @transform_1, window_bounds = array<i64: 1, 32>}, {pipeline_mode = #tpu.pipeline_mode<synchronous>, transform_indices = @transform_2, window_bounds = array<i64: 1, 32>}, {pipeline_mode = #tpu.pipeline_mode<synchronous>, transform_indices = @transform_3, window_bounds = array<i64: 32, 96>}, {pipeline_mode = #tpu.pipeline_mode<synchronous>, transform_indices = @transform_4, window_bounds = array<i64: 1, 96>}, {pipeline_mode = #tpu.pipeline_mode<synchronous>, transform_indices = @transform_5, window_bounds = array<i64: 32, 32>}, {pipeline_mode = #tpu.pipeline_mode<synchronous>, transform_indices = @transform_6, window_bounds = array<i64: 1, 32>}, {pipeline_mode = #tpu.pipeline_mode<synchronous>, transform_indices = @transform_7, window_bounds = array<i64: 32, 128>}, {pipeline_mode = #tpu.pipeline_mode<synchronous>, transform_indices = @transform_8, window_bounds = array<i64: 1, 128>}, {pipeline_mode = #tpu.pipeline_mode<synchronous>, transform_indices = @transform_9, window_bounds = array<i64: 128, 32>}, {pipeline_mode = #tpu.pipeline_mode<synchronous>, transform_indices = @transform_10, window_bounds = array<i64: 1, 32>}, {transform_indices = @transform_11, window_bounds = array<i64: 1, 8, 32>}]} {
    %c0 = arith.constant 0 : index
    %c0_0 = arith.constant 0 : index
    %c0_1 = arith.constant 0 : index
    %0 = vector.load %arg1[%c0, %c0_0, %c0_1] : memref<1x8x32xf32, #tpu.memory_space<vmem>>, vector<1x8x32xf32>
    %1 = vector.shape_cast %0 : vector<1x8x32xf32> to vector<8x32xf32>
    %c0_2 = arith.constant 0 : index
    %c0_3 = arith.constant 0 : index
    %2 = vector.load %arg2[%c0_2, %c0_3] : memref<1x32xf32, #tpu.memory_space<vmem>>, vector<1x32xf32>
    %c0_4 = arith.constant 0 : index
    %c0_5 = arith.constant 0 : index
    %3 = vector.load %arg3[%c0_4, %c0_5] : memref<1x32xf32, #tpu.memory_space<vmem>>, vector<1x32xf32>
    %cst = arith.constant dense<0.000000e+00> : vector<8xf32>
    %4 = vector.multi_reduction <add>, %1, %cst [1] : vector<8x32xf32> to vector<8xf32>
    %5 = vector.shape_cast %4 : vector<8xf32> to vector<8x1xf32>
    %cst_6 = arith.constant 3.200000e+01 : f32
    %6 = vector.broadcast %cst_6 : f32 to vector<8x1xf32>
    %7 = arith.divf %5, %6 : vector<8x1xf32>
    %8 = vector.broadcast %7 : vector<8x1xf32> to vector<8x32xf32>
    %9 = arith.subf %1, %8 : vector<8x32xf32>
    %10 = arith.mulf %9, %9 : vector<8x32xf32>
    %cst_7 = arith.constant dense<0.000000e+00> : vector<8xf32>
    %11 = vector.multi_reduction <add>, %10, %cst_7 [1] : vector<8x32xf32> to vector<8xf32>
    %12 = vector.shape_cast %11 : vector<8xf32> to vector<8x1xf32>
    %cst_8 = arith.constant 3.200000e+01 : f32
    %13 = vector.broadcast %cst_8 : f32 to vector<8x1xf32>
    %14 = arith.divf %12, %13 : vector<8x1xf32>
    %cst_9 = arith.constant 9.99999974E-6 : f32
    %15 = vector.broadcast %cst_9 : f32 to vector<8x1xf32>
    %16 = arith.addf %14, %15 : vector<8x1xf32>
    %17 = math.rsqrt %16 : vector<8x1xf32>
    %18 = vector.broadcast %17 : vector<8x1xf32> to vector<8x32xf32>
    %19 = arith.mulf %9, %18 : vector<8x32xf32>
    %20 = vector.broadcast %2 : vector<1x32xf32> to vector<8x32xf32>
    %21 = arith.mulf %19, %20 : vector<8x32xf32>
    %22 = vector.broadcast %3 : vector<1x32xf32> to vector<8x32xf32>
    %23 = arith.addf %21, %22 : vector<8x32xf32>
    %c0_10 = arith.constant 0 : index
    %c0_11 = arith.constant 0 : index
    %24 = vector.load %arg4[%c0_10, %c0_11] : memref<32x96xf32, #tpu.memory_space<vmem>>, vector<32x96xf32>
    %cst_12 = arith.constant dense<0.000000e+00> : vector<8x96xf32>
    %25 = tpu.matmul %23, %24, %cst_12 {dimension_numbers = #tpu.dot_dimension_numbers<[1], [0], [0], [1], [0, 0, 1, 1], [], []>} : vector<8x32xf32>, vector<32x96xf32>, vector<8x96xf32> -> vector<8x96xf32>
    %c0_13 = arith.constant 0 : index
    %c0_14 = arith.constant 0 : index
    %26 = vector.load %arg5[%c0_13, %c0_14] : memref<1x96xf32, #tpu.memory_space<vmem>>, vector<1x96xf32>
    %27 = vector.broadcast %26 : vector<1x96xf32> to vector<8x96xf32>
    %28 = arith.addf %25, %27 : vector<8x96xf32>
    %29 = vector.extract_strided_slice %28 {offsets = [0, 0], sizes = [8, 8], strides = [1, 1]} : vector<8x96xf32> to vector<8x8xf32>
    %30 = vector.extract_strided_slice %28 {offsets = [0, 32], sizes = [8, 8], strides = [1, 1]} : vector<8x96xf32> to vector<8x8xf32>
    %31 = vector.extract_strided_slice %28 {offsets = [0, 64], sizes = [8, 8], strides = [1, 1]} : vector<8x96xf32> to vector<8x8xf32>
    %cst_15 = arith.constant dense<0.000000e+00> : vector<8x8xf32>
    %32 = tpu.matmul %29, %30, %cst_15 {dimension_numbers = #tpu.dot_dimension_numbers<[1], [1], [0], [0], [0, 0, 1, 0], [], []>} : vector<8x8xf32>, vector<8x8xf32>, vector<8x8xf32> -> vector<8x8xf32>
    %cst_16 = arith.constant 0.353553385 : f32
    %33 = vector.broadcast %cst_16 : f32 to vector<8x8xf32>
    %34 = arith.mulf %32, %33 : vector<8x8xf32>
    %cst_17 = arith.constant dense<0xFF800000> : vector<8xf32>
    %35 = vector.multi_reduction <maximumf>, %34, %cst_17 [1] : vector<8x8xf32> to vector<8xf32>
    %36 = vector.shape_cast %35 : vector<8xf32> to vector<8x1xf32>
    %37 = vector.broadcast %36 : vector<8x1xf32> to vector<8x8xf32>
    %38 = arith.subf %34, %37 : vector<8x8xf32>
    %39 = math.exp %38 : vector<8x8xf32>
    %cst_18 = arith.constant dense<0.000000e+00> : vector<8xf32>
    %40 = vector.multi_reduction <add>, %39, %cst_18 [1] : vector<8x8xf32> to vector<8xf32>
    %41 = vector.shape_cast %40 : vector<8xf32> to vector<8x1xf32>
    %42 = tpu.reciprocal %41 {approx = true} : vector<8x1xf32> -> vector<8x1xf32>
    %43 = vector.broadcast %42 : vector<8x1xf32> to vector<8x8xf32>
    %44 = arith.mulf %39, %43 : vector<8x8xf32>
    %cst_19 = arith.constant dense<0.000000e+00> : vector<8x8xf32>
    %45 = tpu.matmul %44, %31, %cst_19 {dimension_numbers = #tpu.dot_dimension_numbers<[1], [0], [0], [1], [0, 0, 1, 1], [], []>} : vector<8x8xf32>, vector<8x8xf32>, vector<8x8xf32> -> vector<8x8xf32>
    %c0_20 = arith.constant 0 : index
    %c0_21 = arith.constant 0 : index
    %46 = vector.load %arg13[%c0_20, %c0_21] : memref<8x32xf32, #tpu.memory_space<vmem>>, vector<8x8xf32>
    tpu.vector_store %arg13[%c0_20, %c0_21], %45 {strides = array<i32>} : memref<8x32xf32, #tpu.memory_space<vmem>>, vector<8x8xf32>,
    %47 = vector.extract_strided_slice %28 {offsets = [0, 8], sizes = [8, 8], strides = [1, 1]} : vector<8x96xf32> to vector<8x8xf32>
    %48 = vector.extract_strided_slice %28 {offsets = [0, 40], sizes = [8, 8], strides = [1, 1]} : vector<8x96xf32> to vector<8x8xf32>
    %49 = vector.extract_strided_slice %28 {offsets = [0, 72], sizes = [8, 8], strides = [1, 1]} : vector<8x96xf32> to vector<8x8xf32>
    %cst_22 = arith.constant dense<0.000000e+00> : vector<8x8xf32>
    %50 = tpu.matmul %47, %48, %cst_22 {dimension_numbers = #tpu.dot_dimension_numbers<[1], [1], [0], [0], [0, 0, 1, 0], [], []>} : vector<8x8xf32>, vector<8x8xf32>, vector<8x8xf32> -> vector<8x8xf32>
    %cst_23 = arith.constant 0.353553385 : f32
    %51 = vector.broadcast %cst_23 : f32 to vector<8x8xf32>
    %52 = arith.mulf %50, %51 : vector<8x8xf32>
    %cst_24 = arith.constant dense<0xFF800000> : vector<8xf32>
    %53 = vector.multi_reduction <maximumf>, %52, %cst_24 [1] : vector<8x8xf32> to vector<8xf32>
    %54 = vector.shape_cast %53 : vector<8xf32> to vector<8x1xf32>
    %55 = vector.broadcast %54 : vector<8x1xf32> to vector<8x8xf32>
    %56 = arith.subf %52, %55 : vector<8x8xf32>
    %57 = math.exp %56 : vector<8x8xf32>
    %cst_25 = arith.constant dense<0.000000e+00> : vector<8xf32>
    %58 = vector.multi_reduction <add>, %57, %cst_25 [1] : vector<8x8xf32> to vector<8xf32>
    %59 = vector.shape_cast %58 : vector<8xf32> to vector<8x1xf32>
    %60 = tpu.reciprocal %59 {approx = true} : vector<8x1xf32> -> vector<8x1xf32>
    %61 = vector.broadcast %60 : vector<8x1xf32> to vector<8x8xf32>
    %62 = arith.mulf %57, %61 : vector<8x8xf32>
    %cst_26 = arith.constant dense<0.000000e+00> : vector<8x8xf32>
    %63 = tpu.matmul %62, %49, %cst_26 {dimension_numbers = #tpu.dot_dimension_numbers<[1], [0], [0], [1], [0, 0, 1, 1], [], []>} : vector<8x8xf32>, vector<8x8xf32>, vector<8x8xf32> -> vector<8x8xf32>
    %c0_27 = arith.constant 0 : index
    %c8 = arith.constant 8 : index
    %64 = vector.load %arg13[%c0_27, %c8] : memref<8x32xf32, #tpu.memory_space<vmem>>, vector<8x8xf32>
    tpu.vector_store %arg13[%c0_27, %c8], %63 {strides = array<i32>} : memref<8x32xf32, #tpu.memory_space<vmem>>, vector<8x8xf32>,
    %65 = vector.extract_strided_slice %28 {offsets = [0, 16], sizes = [8, 8], strides = [1, 1]} : vector<8x96xf32> to vector<8x8xf32>
    %66 = vector.extract_strided_slice %28 {offsets = [0, 48], sizes = [8, 8], strides = [1, 1]} : vector<8x96xf32> to vector<8x8xf32>
    %67 = vector.extract_strided_slice %28 {offsets = [0, 80], sizes = [8, 8], strides = [1, 1]} : vector<8x96xf32> to vector<8x8xf32>
    %cst_28 = arith.constant dense<0.000000e+00> : vector<8x8xf32>
    %68 = tpu.matmul %65, %66, %cst_28 {dimension_numbers = #tpu.dot_dimension_numbers<[1], [1], [0], [0], [0, 0, 1, 0], [], []>} : vector<8x8xf32>, vector<8x8xf32>, vector<8x8xf32> -> vector<8x8xf32>
    %cst_29 = arith.constant 0.353553385 : f32
    %69 = vector.broadcast %cst_29 : f32 to vector<8x8xf32>
    %70 = arith.mulf %68, %69 : vector<8x8xf32>
    %cst_30 = arith.constant dense<0xFF800000> : vector<8xf32>
    %71 = vector.multi_reduction <maximumf>, %70, %cst_30 [1] : vector<8x8xf32> to vector<8xf32>
    %72 = vector.shape_cast %71 : vector<8xf32> to vector<8x1xf32>
    %73 = vector.broadcast %72 : vector<8x1xf32> to vector<8x8xf32>
    %74 = arith.subf %70, %73 : vector<8x8xf32>
    %75 = math.exp %74 : vector<8x8xf32>
    %cst_31 = arith.constant dense<0.000000e+00> : vector<8xf32>
    %76 = vector.multi_reduction <add>, %75, %cst_31 [1] : vector<8x8xf32> to vector<8xf32>
    %77 = vector.shape_cast %76 : vector<8xf32> to vector<8x1xf32>
    %78 = tpu.reciprocal %77 {approx = true} : vector<8x1xf32> -> vector<8x1xf32>
    %79 = vector.broadcast %78 : vector<8x1xf32> to vector<8x8xf32>
    %80 = arith.mulf %75, %79 : vector<8x8xf32>
    %cst_32 = arith.constant dense<0.000000e+00> : vector<8x8xf32>
    %81 = tpu.matmul %80, %67, %cst_32 {dimension_numbers = #tpu.dot_dimension_numbers<[1], [0], [0], [1], [0, 0, 1, 1], [], []>} : vector<8x8xf32>, vector<8x8xf32>, vector<8x8xf32> -> vector<8x8xf32>
    %c0_33 = arith.constant 0 : index
    %c16 = arith.constant 16 : index
    %82 = vector.load %arg13[%c0_33, %c16] : memref<8x32xf32, #tpu.memory_space<vmem>>, vector<8x8xf32>
    tpu.vector_store %arg13[%c0_33, %c16], %81 {strides = array<i32>} : memref<8x32xf32, #tpu.memory_space<vmem>>, vector<8x8xf32>,
    %83 = vector.extract_strided_slice %28 {offsets = [0, 24], sizes = [8, 8], strides = [1, 1]} : vector<8x96xf32> to vector<8x8xf32>
    %84 = vector.extract_strided_slice %28 {offsets = [0, 56], sizes = [8, 8], strides = [1, 1]} : vector<8x96xf32> to vector<8x8xf32>
    %85 = vector.extract_strided_slice %28 {offsets = [0, 88], sizes = [8, 8], strides = [1, 1]} : vector<8x96xf32> to vector<8x8xf32>
    %cst_34 = arith.constant dense<0.000000e+00> : vector<8x8xf32>
    %86 = tpu.matmul %83, %84, %cst_34 {dimension_numbers = #tpu.dot_dimension_numbers<[1], [1], [0], [0], [0, 0, 1, 0], [], []>} : vector<8x8xf32>, vector<8x8xf32>, vector<8x8xf32> -> vector<8x8xf32>
    %cst_35 = arith.constant 0.353553385 : f32
    %87 = vector.broadcast %cst_35 : f32 to vector<8x8xf32>
    %88 = arith.mulf %86, %87 : vector<8x8xf32>
    %cst_36 = arith.constant dense<0xFF800000> : vector<8xf32>
    %89 = vector.multi_reduction <maximumf>, %88, %cst_36 [1] : vector<8x8xf32> to vector<8xf32>
    %90 = vector.shape_cast %89 : vector<8xf32> to vector<8x1xf32>
    %91 = vector.broadcast %90 : vector<8x1xf32> to vector<8x8xf32>
    %92 = arith.subf %88, %91 : vector<8x8xf32>
    %93 = math.exp %92 : vector<8x8xf32>
    %cst_37 = arith.constant dense<0.000000e+00> : vector<8xf32>
    %94 = vector.multi_reduction <add>, %93, %cst_37 [1] : vector<8x8xf32> to vector<8xf32>
    %95 = vector.shape_cast %94 : vector<8xf32> to vector<8x1xf32>
    %96 = tpu.reciprocal %95 {approx = true} : vector<8x1xf32> -> vector<8x1xf32>
    %97 = vector.broadcast %96 : vector<8x1xf32> to vector<8x8xf32>
    %98 = arith.mulf %93, %97 : vector<8x8xf32>
    %cst_38 = arith.constant dense<0.000000e+00> : vector<8x8xf32>
    %99 = tpu.matmul %98, %85, %cst_38 {dimension_numbers = #tpu.dot_dimension_numbers<[1], [0], [0], [1], [0, 0, 1, 1], [], []>} : vector<8x8xf32>, vector<8x8xf32>, vector<8x8xf32> -> vector<8x8xf32>
    %c0_39 = arith.constant 0 : index
    %c24 = arith.constant 24 : index
    %100 = vector.load %arg13[%c0_39, %c24] : memref<8x32xf32, #tpu.memory_space<vmem>>, vector<8x8xf32>
    tpu.vector_store %arg13[%c0_39, %c24], %99 {strides = array<i32>} : memref<8x32xf32, #tpu.memory_space<vmem>>, vector<8x8xf32>,
    %c0_40 = arith.constant 0 : index
    %c0_41 = arith.constant 0 : index
    %101 = vector.load %arg13[%c0_40, %c0_41] : memref<8x32xf32, #tpu.memory_space<vmem>>, vector<8x32xf32>
    %c0_42 = arith.constant 0 : index
    %c0_43 = arith.constant 0 : index
    %102 = vector.load %arg6[%c0_42, %c0_43] : memref<32x32xf32, #tpu.memory_space<vmem>>, vector<32x32xf32>
    %cst_44 = arith.constant dense<0.000000e+00> : vector<8x32xf32>
    %103 = tpu.matmul %101, %102, %cst_44 {dimension_numbers = #tpu.dot_dimension_numbers<[1], [0], [0], [1], [0, 0, 1, 1], [], []>} : vector<8x32xf32>, vector<32x32xf32>, vector<8x32xf32> -> vector<8x32xf32>
    %c0_45 = arith.constant 0 : index
    %c0_46 = arith.constant 0 : index
    %104 = vector.load %arg7[%c0_45, %c0_46] : memref<1x32xf32, #tpu.memory_space<vmem>>, vector<1x32xf32>
    %105 = vector.broadcast %104 : vector<1x32xf32> to vector<8x32xf32>
    %106 = arith.addf %103, %105 : vector<8x32xf32>
    %107 = arith.addf %1, %106 : vector<8x32xf32>
    %cst_47 = arith.constant dense<0.000000e+00> : vector<8xf32>
    %108 = vector.multi_reduction <add>, %107, %cst_47 [1] : vector<8x32xf32> to vector<8xf32>
    %109 = vector.shape_cast %108 : vector<8xf32> to vector<8x1xf32>
    %cst_48 = arith.constant 3.200000e+01 : f32
    %110 = vector.broadcast %cst_48 : f32 to vector<8x1xf32>
    %111 = arith.divf %109, %110 : vector<8x1xf32>
    %112 = vector.broadcast %111 : vector<8x1xf32> to vector<8x32xf32>
    %113 = arith.subf %107, %112 : vector<8x32xf32>
    %114 = arith.mulf %113, %113 : vector<8x32xf32>
    %cst_49 = arith.constant dense<0.000000e+00> : vector<8xf32>
    %115 = vector.multi_reduction <add>, %114, %cst_49 [1] : vector<8x32xf32> to vector<8xf32>
    %116 = vector.shape_cast %115 : vector<8xf32> to vector<8x1xf32>
    %cst_50 = arith.constant 3.200000e+01 : f32
    %117 = vector.broadcast %cst_50 : f32 to vector<8x1xf32>
    %118 = arith.divf %116, %117 : vector<8x1xf32>
    %cst_51 = arith.constant 9.99999974E-6 : f32
    %119 = vector.broadcast %cst_51 : f32 to vector<8x1xf32>
    %120 = arith.addf %118, %119 : vector<8x1xf32>
    %121 = math.rsqrt %120 : vector<8x1xf32>
    %122 = vector.broadcast %121 : vector<8x1xf32> to vector<8x32xf32>
    %123 = arith.mulf %113, %122 : vector<8x32xf32>
    %124 = vector.broadcast %2 : vector<1x32xf32> to vector<8x32xf32>
    %125 = arith.mulf %123, %124 : vector<8x32xf32>
    %126 = vector.broadcast %3 : vector<1x32xf32> to vector<8x32xf32>
    %127 = arith.addf %125, %126 : vector<8x32xf32>
    %c0_52 = arith.constant 0 : index
    %c0_53 = arith.constant 0 : index
    %128 = vector.load %arg8[%c0_52, %c0_53] : memref<32x128xf32, #tpu.memory_space<vmem>>, vector<32x128xf32>
    %cst_54 = arith.constant dense<0.000000e+00> : vector<8x128xf32>
    %129 = tpu.matmul %127, %128, %cst_54 {dimension_numbers = #tpu.dot_dimension_numbers<[1], [0], [0], [1], [0, 0, 1, 1], [], []>} : vector<8x32xf32>, vector<32x128xf32>, vector<8x128xf32> -> vector<8x128xf32>
    %c0_55 = arith.constant 0 : index
    %c0_56 = arith.constant 0 : index
    %130 = vector.load %arg9[%c0_55, %c0_56] : memref<1x128xf32, #tpu.memory_space<vmem>>, vector<1x128xf32>
    %131 = vector.broadcast %130 : vector<1x128xf32> to vector<8x128xf32>
    %132 = arith.addf %129, %131 : vector<8x128xf32>
    %cst_57 = arith.constant 5.000000e-01 : f32
    %133 = vector.broadcast %cst_57 : f32 to vector<8x128xf32>
    %134 = arith.mulf %133, %132 : vector<8x128xf32>
    %cst_58 = arith.constant 0.707106769 : f32
    %135 = vector.broadcast %cst_58 : f32 to vector<8x128xf32>
    %136 = arith.mulf %132, %135 : vector<8x128xf32>
    %137 = math.absf %136 : vector<8x128xf32>
    %cst_59 = arith.constant 0.327591091 : f32
    %138 = vector.broadcast %cst_59 : f32 to vector<8x128xf32>
    %139 = arith.mulf %138, %137 : vector<8x128xf32>
    %cst_60 = arith.constant 1.000000e+00 : f32
    %140 = vector.broadcast %cst_60 : f32 to vector<8x128xf32>
    %141 = arith.addf %140, %139 : vector<8x128xf32>
    %cst_61 = arith.constant 1.000000e+00 : f32
    %142 = vector.broadcast %cst_61 : f32 to vector<8x128xf32>
    %143 = arith.divf %142, %141 : vector<8x128xf32>
    %cst_62 = arith.constant 1.06140542 : f32
    %144 = vector.broadcast %cst_62 : f32 to vector<8x128xf32>
    %145 = arith.mulf %143, %144 : vector<8x128xf32>
    %cst_63 = arith.constant -1.45315206 : f32
    %146 = vector.broadcast %cst_63 : f32 to vector<8x128xf32>
    %147 = arith.addf %146, %145 : vector<8x128xf32>
    %148 = arith.mulf %143, %147 : vector<8x128xf32>
    %cst_64 = arith.constant 1.42141378 : f32
    %149 = vector.broadcast %cst_64 : f32 to vector<8x128xf32>
    %150 = arith.addf %149, %148 : vector<8x128xf32>
    %151 = arith.mulf %143, %150 : vector<8x128xf32>
    %cst_65 = arith.constant -0.284496725 : f32
    %152 = vector.broadcast %cst_65 : f32 to vector<8x128xf32>
    %153 = arith.addf %152, %151 : vector<8x128xf32>
    %154 = arith.mulf %143, %153 : vector<8x128xf32>
    %cst_66 = arith.constant 0.254829586 : f32
    %155 = vector.broadcast %cst_66 : f32 to vector<8x128xf32>
    %156 = arith.addf %155, %154 : vector<8x128xf32>
    %157 = arith.mulf %143, %156 : vector<8x128xf32>
    %cst_67 = arith.constant 0.000000e+00 : f32
    %158 = vector.broadcast %cst_67 : f32 to vector<8x128xf32>
    %159 = arith.subf %158, %137 : vector<8x128xf32>
    %160 = arith.mulf %159, %137 : vector<8x128xf32>
    %161 = math.exp %160 : vector<8x128xf32>
    %162 = arith.mulf %157, %161 : vector<8x128xf32>
    %cst_68 = arith.constant 1.000000e+00 : f32
    %163 = vector.broadcast %cst_68 : f32 to vector<8x128xf32>
    %164 = arith.subf %163, %162 : vector<8x128xf32>
    %cst_69 = arith.constant 0.000000e+00 : f32
    %165 = vector.broadcast %cst_69 : f32 to vector<8x128xf32>
    %166 = arith.cmpf olt, %136, %165 : vector<8x128xf32>
    %cst_70 = arith.constant 0.000000e+00 : f32
    %167 = vector.broadcast %cst_70 : f32 to vector<8x128xf32>
    %168 = arith.subf %167, %164 : vector<8x128xf32>
    %169 = arith.select %166, %168, %164 : vector<8x128xi1>, vector<8x128xf32>
    %cst_71 = arith.constant 1.000000e+00 : f32
    %170 = vector.broadcast %cst_71 : f32 to vector<8x128xf32>
    %171 = arith.addf %170, %169 : vector<8x128xf32>
    %172 = arith.mulf %134, %171 : vector<8x128xf32>
    %c0_72 = arith.constant 0 : index
    %c0_73 = arith.constant 0 : index
    %173 = vector.load %arg10[%c0_72, %c0_73] : memref<128x32xf32, #tpu.memory_space<vmem>>, vector<128x32xf32>
    %cst_74 = arith.constant dense<0.000000e+00> : vector<8x32xf32>
    %174 = tpu.matmul %172, %173, %cst_74 {dimension_numbers = #tpu.dot_dimension_numbers<[1], [0], [0], [1], [0, 0, 1, 1], [], []>} : vector<8x128xf32>, vector<128x32xf32>, vector<8x32xf32> -> vector<8x32xf32>
    %c0_75 = arith.constant 0 : index
    %c0_76 = arith.constant 0 : index
    %175 = vector.load %arg11[%c0_75, %c0_76] : memref<1x32xf32, #tpu.memory_space<vmem>>, vector<1x32xf32>
    %176 = vector.broadcast %175 : vector<1x32xf32> to vector<8x32xf32>
    %177 = arith.addf %174, %176 : vector<8x32xf32>
    %178 = arith.addf %107, %177 : vector<8x32xf32>
    %c0_77 = arith.constant 0 : index
    %c0_78 = arith.constant 0 : index
    %c0_79 = arith.constant 0 : index
    %179 = vector.load %arg12[%c0_77, %c0_78, %c0_79] : memref<1x8x32xf32, #tpu.memory_space<vmem>>, vector<1x8x32xf32>
    %180 = vector.shape_cast %179 : vector<1x8x32xf32> to vector<8x32xf32>
    %181 = vector.shape_cast %178 : vector<8x32xf32> to vector<1x8x32xf32>
    tpu.vector_store %arg12[%c0_77, %c0_78, %c0_79], %181 {strides = array<i32>} : memref<1x8x32xf32, #tpu.memory_space<vmem>>, vector<1x8x32xf32>,
    return
  }
  func.func @transform_0(%arg0: i32) -> (i32, i32, i32) {
    %c0_i32 = arith.constant 0 : i32
    %c0_i32_0 = arith.constant 0 : i32
    %c0_i32_1 = arith.constant 0 : i32
    return %arg0, %c0_i32, %c0_i32_0 : i32, i32, i32
  }
  func.func @transform_1(%arg0: i32) -> (i32, i32) {
    %c0_i32 = arith.constant 0 : i32
    %c0_i32_0 = arith.constant 0 : i32
    %c0_i32_1 = arith.constant 0 : i32
    return %c0_i32, %c0_i32_0 : i32, i32
  }
  func.func @transform_2(%arg0: i32) -> (i32, i32) {
    %c0_i32 = arith.constant 0 : i32
    %c0_i32_0 = arith.constant 0 : i32
    %c0_i32_1 = arith.constant 0 : i32
    return %c0_i32, %c0_i32_0 : i32, i32
  }
  func.func @transform_3(%arg0: i32) -> (i32, i32) {
    %c0_i32 = arith.constant 0 : i32
    %c0_i32_0 = arith.constant 0 : i32
    %c0_i32_1 = arith.constant 0 : i32
    return %c0_i32, %c0_i32_0 : i32, i32
  }
  func.func @transform_4(%arg0: i32) -> (i32, i32) {
    %c0_i32 = arith.constant 0 : i32
    %c0_i32_0 = arith.constant 0 : i32
    %c0_i32_1 = arith.constant 0 : i32
    return %c0_i32, %c0_i32_0 : i32, i32
  }
  func.func @transform_5(%arg0: i32) -> (i32, i32) {
    %c0_i32 = arith.constant 0 : i32
    %c0_i32_0 = arith.constant 0 : i32
    %c0_i32_1 = arith.constant 0 : i32
    return %c0_i32, %c0_i32_0 : i32, i32
  }
  func.func @transform_6(%arg0: i32) -> (i32, i32) {
    %c0_i32 = arith.constant 0 : i32
    %c0_i32_0 = arith.constant 0 : i32
    %c0_i32_1 = arith.constant 0 : i32
    return %c0_i32, %c0_i32_0 : i32, i32
  }
  func.func @transform_7(%arg0: i32) -> (i32, i32) {
    %c0_i32 = arith.constant 0 : i32
    %c0_i32_0 = arith.constant 0 : i32
    %c0_i32_1 = arith.constant 0 : i32
    return %c0_i32, %c0_i32_0 : i32, i32
  }
  func.func @transform_8(%arg0: i32) -> (i32, i32) {
    %c0_i32 = arith.constant 0 : i32
    %c0_i32_0 = arith.constant 0 : i32
    %c0_i32_1 = arith.constant 0 : i32
    return %c0_i32, %c0_i32_0 : i32, i32
  }
  func.func @transform_9(%arg0: i32) -> (i32, i32) {
    %c0_i32 = arith.constant 0 : i32
    %c0_i32_0 = arith.constant 0 : i32
    %c0_i32_1 = arith.constant 0 : i32
    return %c0_i32, %c0_i32_0 : i32, i32
  }
  func.func @transform_10(%arg0: i32) -> (i32, i32) {
    %c0_i32 = arith.constant 0 : i32
    %c0_i32_0 = arith.constant 0 : i32
    %c0_i32_1 = arith.constant 0 : i32
    return %c0_i32, %c0_i32_0 : i32, i32
  }
  func.func @transform_11(%arg0: i32) -> (i32, i32, i32) {
    %c0_i32 = arith.constant 0 : i32
    %c0_i32_0 = arith.constant 0 : i32
    %c0_i32_1 = arith.constant 0 : i32
    return %arg0, %c0_i32, %c0_i32_0 : i32, i32, i32
  }
}

</mosaic_0001>

<bundles_post_ra>
// kernel: tpu_custom_call.1
= control target key start
LH: loop header
LB: loop body
LE: loop exit
PB: predicated region body
PF: predicated region fallthrough
CT: control target
= control target key end

     0   :  { %s2321_s0 = inlined_call_operand.vmem [shape: f32[2,8,32], index: 0, kind: input, shape index: {}]   ;;  %s2322_s1 = inlined_call_operand.vmem [shape: f32[1,32], index: 1, kind: input, shape index: {}]   ;;  %s2323_s2 = inlined_call_operand.vmem [shape: f32[1,32], index: 2, kind: input, shape index: {}]   ;;  %s2324_s3 = inlined_call_operand.vmem [shape: f32[32,96], index: 3, kind: input, shape index: {}]   ;;  %s2325_s4 = inlined_call_operand.vmem [shape: f32[1,96], index: 4, kind: input, shape index: {}]   ;;  %s2326_s5 = inlined_call_operand.vmem [shape: f32[32,32], index: 5, kind: input, shape index: {}]   ;;  %s2327_s6 = inlined_call_operand.vmem [shape: f32[1,32], index: 6, kind: input, shape index: {}]   ;;  %s2328_s7 = inlined_call_operand.vmem [shape: f32[32,128], index: 7, kind: input, shape index: {}]   ;;  %s2329_s8 = inlined_call_operand.vmem [shape: f32[1,128], index: 8, kind: input, shape index: {}]   ;;  %s2330_s9 = inlined_call_operand.vmem [shape: f32[128,32], index: 9, kind: input, shape index: {}]   ;;  %s2331_s10 = inlined_call_operand.vmem [shape: f32[1,32], index: 10, kind: input, shape index: {}]   ;;  %s2332_s11 = inlined_call_operand.hbm [shape: f32[2,8,32], index: 11, kind: output, shape index: {}]  }
   0x1   :  { %2333 = sst [smem:[#allocation6_spill]] %s2321_s0 }
   0x2   :  { %16 = vsyncpa [#allocation4], 0 }
   0x3   :  { %18 = vsyncpa [#allocation4 + $0x1], 0  ;;  %s2012_s17 = smov 0   ;;  %s2014_s18 = smov 0  }
   0x4   :  { %s2016_s19 = smov 0   ;;  %s2018_s20 = smov 0  }
   0x5 LB: > { %s2033_s21 = sadd.s32 4294967295, %s1932_s20   ;;  %s1561_s22 = sadd.s32 4294967294, %s1932_s20   ;;  %s1932_s20 = sphi %s2018_s20, %s2340_s20   ;;  %s1928_s19 = sphi %s2016_s19, %s2339_s19   ;;  %s1924_s18 = sphi %s2014_s18, %s2338_s18   ;;  %s1920_s17 = sphi %s2012_s17, %s2337_s17  }
   0x6   : > { %s2037_s23 = sadd.s32 1, %s1932_s20   ;;  %s267_s24 = sadd.s32 1, %s1928_s19 }
   0x7   : > { %s264_s25 = ssub.s32 %s1932_s20, %s2037_s23  ;;  %p277_p0 = scmp.ne.s32.totalorder %s1928_s19, %s1924_s18 }
   0x8   : > { %p265_p1 = scmp.eq.s32.totalorder %s264_s25, 0  ;;  %p278_p2 = scmp.eq.s32.totalorder %s2033_s21, 1 }
   0x9   : > { %p283_p3 = scmp.ne.s32.totalorder %s1924_s18, %s1920_s17  ;;  %p284_p4 = scmp.eq.s32.totalorder %s1561_s22, 1 }
   0xa   : > { %s2048_s26 = scalar_select %p265_p1, %s1928_s19, %s267_s24  }
   0xb   : > { %p2050_p5 = por %p278_p2, %p277_p0  ;;  %p2054_p6 = por %p284_p4, %p283_p3 }
   0xc   : > { %p1564_p7 = scmp.ge.s32.totalorder %s1932_s20, 1  ;;  %p339_p8 = scmp.lt.s32.totalorder %s1932_s20, 3 }
   0xe   : > { %p340_p9 = pnand %p1564_p7, %p339_p8 }
   0xf   : > { %p378_p10 = scmp.lt.s32.totalorder (!%p340_p9), %s2033_s21, 1  ;;  %vm385_vm0 = vcmask (!%p340_p9), 261120   ;;  %s2336_s0 = sld [smem:[#allocation6_spill]] (!%p340_p9)  ;;  %v414_v7 = vld [vmem:[%s2324_s3] sm:$0xff] (!%p340_p9)  ;;  %v415_v8 = vld [vmem:[%s2324_s3 + $0x8] sm:$0xff] (!%p340_p9)  ;;  %v416_v9 = vld [vmem:[%s2324_s3 + $0x10] sm:$0xff] (!%p340_p9) }
  0x10   : > { %343 = sbr.rel (%p340_p9) target bundleno = 2574 (0xa0e), region = 64  ;;  %v1934_v10 = vmov (!%p340_p9), 0.0|0.0   ;;  %v1749_v11 = vpack.c.bf16 (!%p340_p9), %v415_v8, %v414_v7  ;;  %v417_v12 = vld [vmem:[%s2324_s3 + $0x18] sm:$0xff] (!%p340_p9)  ;;  %vm1935_vm1 = vmmov (!%p340_p9), 0   ;;  %v1936_v13 = vmov (!%p340_p9), 0.0   ;;  %s1937_s25 = smov (!%p340_p9), 120  }
  0x11   : > { %1748 = vmatprep.subr.bf16.mxu1 (!%p340_p9), %v1934_v10  ;;  %1648 = vmatprep.mubr.msk.f32.mxu1 (!%p340_p9), %vm1935_vm1, %v1936_v13  ;;  %v1752_v14 = vpack.c.bf16 (!%p340_p9), %v417_v12, %v416_v9  ;;  %v2094_v19 = vld [vmem:[%s2322_s1] ss:$0 sm:$0xff] (!%p340_p9)  ;;  %s1940_s12 = smov (!%p340_p9), 80   ;;  %s1941_s13 = smov (!%p340_p9), 112   ;;  %vm501_vm2 = vcmask (!%p340_p9), 64512   ;;  %vm835_vm3 = vcmask (!%p340_p9), 130112  }
  0x12   : > { %1661 = vmatprep.subr.mxu0 (!%p340_p9), %v1936_v13  ;;  %1663 = vmatprep.mubr.msk.f32.mxu0 (!%p340_p9), %vm1935_vm1, %v1936_v13  ;;  %v2099_v21 = vld [vmem:[%s2323_s2] ss:$0 sm:$0xff] (!%p340_p9)  ;;  %s1943_s15 = smov (!%p340_p9), 104   ;;  %s1944_s16 = smov (!%p340_p9), 64   ;;  %vm1007_vm4 = vcmask (!%p340_p9), 195712   ;;  %vm1179_vm5 = vcmask (!%p340_p9), 261312  }
  0x13   : > { %1750 = vmatpush3.bf16.msra.mxu1 (!%p340_p9), %v1749_v11  ;;  %v1569_v24 = vld [vmem:[%s2325_s4] ss:$0 sm:$0xff] (!%p340_p9)  ;;  %s1945_s22 = smov (!%p340_p9), 48   ;;  %s1946_s24 = smov (!%p340_p9), 40  }
  0x14   : > { %1751 = vmatprep.subr.bf16.mxu1 (!%p340_p9), %v1934_v10 }
  0x17   : > { %s379_s29 = scalar_select %p378_p10, %s2033_s21, 1  ;;  %1753 = vmatpush3.bf16.msra.mxu1 %v1752_v14 }
  0x18   : > { %1651 = vmatprep.subr.mxu1 %v1936_v13 }
  0x19   : > { %s1566_s30 = sshll.u32 %s379_s29, 3  ;;  %s1938_s29 = smov 96  }
  0x1a   : > { %s381_s14 = scalar_lea.vmem %s2336_s0, %s1566_s30  ;;  %s1939_s30 = smov 88  }
  0x1b   : > { %v2065_v0 = vld [vmem:[%s381_s14] sm:$0xff]  ;;  %s1942_s14 = smov 72  }
  0x1c   : > { %v386_v1 = vsel %vm385_vm0, %v2065_v0, 0.0 }
  0x1d   : > { %387 = vadd.xlane.f32.xlu0 %v386_v1 }
  0xaa   : > { %v388_v2 = vpop.xlane.xlu0 %387 }
  0xab   : > { %v390_v3 = vmul.f32 0.03125, %v388_v2 }
  0xad   : > { %v391_v4 = vsub.f32 %v2065_v0, %v390_v3 }
  0xaf   : > { %v392_v5 = vmul.f32 %v391_v4, %v391_v4 }
  0xb1   : > { %v393_v6 = vsel %vm385_vm0, %v392_v5, 0.0 }
  0xb2   : > { %394 = vadd.xlane.f32.xlu0 %v393_v6 }
 0x13f   : > { %v395_v15 = vpop.xlane.xlu0 %394 }
 0x140   : > { %v396_v16 = vmul.f32 0.03125, %v395_v15 }
 0x142   : > { %v397_v17 = vadd.f32 1e-05, %v396_v16 }
 0x144   : > { %1846 = vrsqrt.f32 %v397_v17 }
 0x14e   : > { %v1847_v18 = vpop.eup %1846 }
 0x14f   : > { %v399_v20 = vmul.f32 %v1847_v18, %v391_v4 }
 0x151   : > { %v406_v22 = vmul.f32 %v2094_v19, %v399_v20 }
 0x153   : > { %v413_v23 = vadd.f32 %v2099_v21, %v406_v22 }
 0x155   : > { %1649 = vmatmul.mubr.msk.f32.vlgmr.msra.gmra.mrb[0].mxu1 %vm385_vm0, %v413_v23 }
 0x156   : > { %1653 = vmatprep.mubr.msk.f32.mxu1 %vm1935_vm1, %v1936_v13 }
 0x228   : > { %v494_v25 = vpop.f32.mrb[0].mxu1 }
 0x229   : > { %v2109_v26 = vadd.f32 %v1569_v24, %v494_v25  ;;  %v1650_v27 = vpop.f32.mrb[1].mxu1 }
 0x22b   : > { %665 = vrot.lane.b32.xlu0 %v2109_v26, %s1937_s25  ;;  %499 = vrot.lane.b32.xlu1 %v2109_v26, %s1938_s29  ;;  %s1947_s25 = smov 56   ;;  %s1950_s29 = smov 24  }
 0x22f   : > { %667 = vrot.lane.b32.xlu1 %v2109_v26, %s1939_s30 }
 0x233   : > { %839 = vrot.lane.b32.xlu1 %v2109_v26, %s1940_s12 }
 0x237   : > { %837 = vrot.lane.b32.xlu1 %v2109_v26, %s1941_s13 }
 0x23b   : > { %1011 = vrot.lane.b32.xlu1 %v2109_v26, %s1942_s14 }
 0x23f   : > { %1009 = vrot.lane.b32.xlu1 %v2109_v26, %s1943_s15  ;;  %s375_s15 = sand.u32 1, %s1924_s18  }
 0x29d   : > { %v500_v28 = vpop.permute.xlu1 %499  ;;  %v666_v30 = vpop.permute.xlu0 %665 }
 0x29e   : > { %1652 = vmatpush3.xpose.msk.msra.mxu1 %vm501_vm2, %v500_v28 }
 0x29f   : > { %1656 = vmatprep.subr.mxu1 %v1936_v13 }
 0x2a1   : > { %1654 = vmatmul.mubr.msk.f32.vlgmr.msra.gmra.mrb[2].mxu1 %vm501_vm2, %v2109_v26  ;;  %v668_v29 = vpop.permute.xlu1 %667 }
 0x2a2   : > { %1662 = vmatpush3.xpose.msk.msra.mxu0 %vm501_vm2, %v668_v29  ;;  %1658 = vmatprep.mubr.msk.f32.mxu1 %vm1935_vm1, %v1936_v13 }
 0x2a3   : > { %1671 = vmatprep.subr.mxu0 %v1936_v13 }
 0x2a5   : > { %1664 = vmatmul.mubr.msk.f32.vlgmr.msra.gmra.mrb[0].mxu0 %vm501_vm2, %v666_v30  ;;  %v840_v31 = vpop.permute.xlu1 %839  ;;  %v1182_v30 = vld [vmem:[%s2326_s5] sm:$0xff] }
 0x2a6   : > { %1672 = vmatpush3.xpose.msk.msra.mxu0 %vm501_vm2, %v840_v31  ;;  %1673 = vmatprep.mubr.msk.f32.mxu0 %vm1935_vm1, %v1936_v13  ;;  %v1183_v31 = vld [vmem:[%s2326_s5 + $0x8] sm:$0xff] }
 0x2a7   : > { %1681 = vmatprep.subr.mxu0 %v1936_v13 }
 0x2a9   : > { %v838_v32 = vpop.permute.xlu1 %837 }
 0x2aa   : > { %1674 = vmatmul.mubr.msk.f32.vlgmr.msra.gmra.mrb[2].mxu0 %vm501_vm2, %v838_v32  ;;  %v1755_v32 = vpack.c.bf16 %v1183_v31, %v1182_v30  ;;  %v1585_v31 = vld [vmem:[%s2329_s8] ss:$0 sm:$0xff] }
 0x2ab   : > { %1683 = vmatprep.mubr.msk.f32.mxu0 %vm1935_vm1, %v1936_v13 }
 0x2ad   : > { %v1012_v33 = vpop.permute.xlu1 %1011 }
 0x2ae   : > { %1682 = vmatpush3.xpose.msk.msra.mxu0 %vm501_vm2, %v1012_v33  ;;  %v1184_v33 = vld [vmem:[%s2326_s5 + $0x10] sm:$0xff] }
 0x2af   : > { %1766 = vmatprep.subr.bf16.mxu0 %v1934_v10 }
 0x2b1   : > { %v1010_v34 = vpop.permute.xlu1 %1009 }
 0x2b2   : > { %1684 = vmatmul.mubr.msk.f32.vlgmr.msra.gmra.mrb[4].mxu0 %vm501_vm2, %v1010_v34  ;;  %v1185_v34 = vld [vmem:[%s2326_s5 + $0x18] sm:$0xff] }
 0x2b3   : > { %1745 = vmatprep.mubr.msk.f32.mxu0 %vm1935_vm1, %v1936_v13 }
 0x374   : > { %v572_v35 = vpop.f32.mrb[2].mxu1 }
 0x375   : > { %v576_v36 = vmul.f32 0.35355338, %v572_v35  ;;  %v1655_v37 = vpop.f32.mrb[3].mxu1  ;;  %v1758_v35 = vpack.c.bf16 %v1185_v34, %v1184_v33 }
 0x377   : > { %v577_v38 = vsel %vm501_vm2, %v576_v36, -inf }
 0x378   : > { %v739_v39 = vpop.f32.mrb[0].mxu0  ;;  %578 = vmax.xlane.f32.xlu1 %v577_v38 }
 0x379   : > { %v743_v40 = vmul.f32 0.35355338, %v739_v39  ;;  %v1665_v41 = vpop.f32.mrb[1].mxu0 }
 0x37b   : > { %v744_v42 = vsel %vm501_vm2, %v743_v40, -inf }
 0x37c   : > { %745 = vmax.xlane.f32.xlu0 %v744_v42 }
 0x37d   : > { %v911_v43 = vpop.f32.mrb[2].mxu0 }
 0x37e   : > { %v915_v44 = vmul.f32 0.35355338, %v911_v43  ;;  %v1675_v45 = vpop.f32.mrb[3].mxu0 }
 0x380   : > { %v916_v46 = vsel %vm501_vm2, %v915_v44, -inf }
 0x381   : > { %917 = vmax.xlane.f32.xlu1 %v916_v46  ;;  %v1583_v46 = vld [vmem:[%s2327_s6] ss:$0 sm:$0xff] }
 0x385   : > { %v1083_v47 = vpop.f32.mrb[4].mxu0 }
 0x386   : > { %v1087_v48 = vmul.f32 0.35355338, %v1083_v47  ;;  %v1685_v49 = vpop.f32.mrb[5].mxu0 }
 0x388   : > { %v1088_v50 = vsel %vm501_vm2, %v1087_v48, -inf }
 0x389   : > { %1089 = vmax.xlane.f32.xlu0 %v1088_v50 }
 0x392   : > { %588 = vrot.lane.b32.xlu1 %v2109_v26, %s1944_s16  ;;  %s1565_s16 = sshll.u32 %s375_s15, 3 }
 0x405   : > { %v579_v51 = vpop.xlane.xlu1 %578 }
 0x406   : > { %v580_v52 = vsub.f32 %v576_v36, %v579_v51 }
 0x408   : > { %v581_v53 = vmul.f32 1.442695, %v580_v52 }
 0x409   : > { %v746_v54 = vpop.xlane.xlu0 %745 }
 0x40a   : > { %1848 = vpow2.f32 %v581_v53  ;;  %v747_v55 = vsub.f32 %v743_v40, %v746_v54 }
 0x40c   : > { %v748_v56 = vmul.f32 1.442695, %v747_v55 }
 0x40e   : > { %1850 = vpow2.f32 %v748_v56  ;;  %v918_v57 = vpop.xlane.xlu1 %917  ;;  %v1282_v56 = vld [vmem:[%s2328_s7] sm:$0xff] }
 0x40f   : > { %v919_v58 = vsub.f32 %v915_v44, %v918_v57 }
 0x411   : > { %v920_v59 = vmul.f32 1.442695, %v919_v58  ;;  %v1284_v58 = vld [vmem:[%s2328_s7 + $0x10] sm:$0xff] }
 0x412   : > { %v589_v60 = vpop.permute.xlu1 %588 }
 0x413   : > { %1852 = vpow2.f32 %v920_v59  ;;  %1657 = vmatpush3.msra.mxu1 %v589_v60  ;;  %v1285_v59 = vld [vmem:[%s2328_s7 + $0x18] sm:$0xff] }
 0x414   : > { %v1849_v61 = vpop.eup %1848  ;;  %1666 = vmatprep.subr.mxu1 %v1936_v13  ;;  %v1764_v60 = vpack.c.bf16 %v1285_v59, %v1284_v58  ;;  %v1587_v58 = vld [vmem:[%s2331_s10] ss:$0 sm:$0xff] }
 0x415   : > { %v583_v62 = vsel %vm501_vm2, %v1849_v61, 0.0 }
 0x416   : > { %v1090_v63 = vpop.xlane.xlu0 %1089  ;;  %584 = vadd.xlane.f32.xlu1 %v583_v62 }
 0x417   : > { %v1091_v1 = vsub.f32 %v1087_v48, %v1090_v63 }
 0x418   : > { %v1851_v2 = vpop.eup %1850 }
 0x419   : > { %v1092_v3 = vmul.f32 1.442695, %v1091_v1  ;;  %v750_v4 = vsel %vm501_vm2, %v1851_v2, 0.0 }
 0x41a   : > { %751 = vadd.xlane.f32.xlu0 %v750_v4 }
 0x41b   : > { %1854 = vpow2.f32 %v1092_v3 }
 0x41d   : > { %v1853_v5 = vpop.eup %1852 }
 0x41e   : > { %v922_v6 = vsel %vm501_vm2, %v1853_v5, 0.0 }
 0x41f   : > { %923 = vadd.xlane.f32.xlu1 %v922_v6  ;;  %v1394_v6 = vld [vmem:[%s2330_s9 + $0x8] sm:$0xff] }
 0x425   : > { %v1855_v7 = vpop.eup %1854 }
 0x426   : > { %v1094_v8 = vsel %vm501_vm2, %v1855_v7, 0.0 }
 0x427   : > { %1095 = vadd.xlane.f32.xlu0 %v1094_v8 }
 0x430   : > { %927 = vrot.lane.b32.xlu1 %v2109_v26, %s1945_s22  ;;  %s1489_s22 = scalar_lea.sflag [#allocation4], %s375_s15 }
 0x434   : > { %1099 = vrot.lane.b32.xlu1 %v2109_v26, %s1946_s24  ;;  %s1948_s24 = smov 8  }
 0x43d   : > { %755 = vrot.lane.b32.xlu0 %v2109_v26, %s1947_s25  ;;  %s1949_s25 = smov 16  }
 0x4a3   : > { %v585_v9 = vpop.xlane.xlu1 %584 }
 0x4a4   : > { %1856 = vrcp.f32 %v585_v9  ;;  %v1397_v9 = vld [vmem:[%s2330_s9 + $0x20] sm:$0xff] }
 0x4a7   : > { %v752_v11 = vpop.xlane.xlu0 %751 }
 0x4a8   : > { %1858 = vrcp.f32 %v752_v11  ;;  %v1398_v11 = vld [vmem:[%s2330_s9 + $0x28] sm:$0xff] }
 0x4ac   : > { %v924_v12 = vpop.xlane.xlu1 %923 }
 0x4ad   : > { %1860 = vrcp.f32 %v924_v12  ;;  %v1773_v12 = vpack.c.bf16 %v1398_v11, %v1397_v9 }
 0x4ae   : > { %v1857_v14 = vpop.eup %1856 }
 0x4af   : > { %v587_v15 = vmul.f32 %v1857_v14, %v1849_v61  ;;  %v1399_v14 = vld [vmem:[%s2330_s9 + $0x30] sm:$0xff] }
 0x4b0   : > { %v928_v20 = vpop.permute.xlu1 %927 }
 0x4b1   : > { %1659 = vmatmul.mubr.msk.f32.vlgmr.msra.gmra.mrb[4].mxu1 %vm501_vm2, %v587_v15  ;;  %v1400_v15 = vld [vmem:[%s2330_s9 + $0x38] sm:$0xff] }
 0x4b2   : > { %1668 = vmatprep.mubr.msk.f32.mxu1 %vm1935_vm1, %v1936_v13  ;;  %v1859_v17 = vpop.eup %1858 }
 0x4b3   : > { %v754_v18 = vmul.f32 %v1859_v17, %v1851_v2  ;;  %v1401_v17 = vld [vmem:[%s2330_s9 + $0x40] sm:$0xff] }
 0x4b4   : > { %v1096_v16 = vpop.xlane.xlu0 %1095  ;;  %v1100_v25 = vpop.permute.xlu1 %1099 }
 0x4b5   : > { %1862 = vrcp.f32 %v1096_v16  ;;  %v1776_v16 = vpack.c.bf16 %v1400_v15, %v1399_v14 }
 0x4b7   : > { %v1861_v23 = vpop.eup %1860 }
 0x4b8   : > { %v756_v22 = vpop.permute.xlu0 %755  ;;  %v926_v24 = vmul.f32 %v1861_v23, %v1853_v5  ;;  %v1393_v5 = vld [vmem:[%s2330_s9] sm:$0xff]  ;;  %v1404_v23 = vld [vmem:[%s2330_s9 + $0x58] sm:$0xff] }
 0x4b9   : > { %1667 = vmatpush3.msra.mxu1 %v756_v22  ;;  %v1403_v22 = vld [vmem:[%s2330_s9 + $0x50] sm:$0xff] }
 0x4ba   : > { %1669 = vmatmul.mubr.msk.f32.vlgmr.msra.gmra.mrb[6].mxu1 %vm501_vm2, %v754_v18  ;;  %1676 = vmatprep.subr.mxu1 %v1936_v13  ;;  %v1402_v18 = vld [vmem:[%s2330_s9 + $0x48] sm:$0xff] }
 0x4bb   : > { %1677 = vmatpush3.msra.mxu1 %v928_v20  ;;  %1678 = vmatprep.mubr.msk.f32.mxu1 %vm1935_vm1, %v1936_v13  ;;  %v1779_v20 = vpack.c.bf16 %v1402_v18, %v1401_v17 }
 0x4bc   : > { %1686 = vmatprep.subr.mxu1 %v1936_v13 }
 0x4be   : > { %1679 = vmatmul.mubr.msk.f32.vlgmr.msra.gmra.mrb[8].mxu1 %vm501_vm2, %v926_v24  ;;  %v1782_v24 = vpack.c.bf16 %v1404_v23, %v1403_v22 }
 0x4bf   : > { %v1863_v26 = vpop.eup %1862  ;;  %1687 = vmatpush3.msra.mxu1 %v1100_v25  ;;  %1688 = vmatprep.mubr.msk.f32.mxu1 %vm1935_vm1, %v1936_v13  ;;  %v1405_v25 = vld [vmem:[%s2330_s9 + $0x60] sm:$0xff] }
 0x4c0   : > { %v1098_v27 = vmul.f32 %v1863_v26, %v1855_v7  ;;  %1754 = vmatprep.subr.bf16.mxu1 %v1934_v10  ;;  %v1767_v7 = vpack.c.bf16 %v1394_v6, %v1393_v5  ;;  %v1406_v26 = vld [vmem:[%s2330_s9 + $0x68] sm:$0xff] }
 0x4c2   : > { %1689 = vmatmul.mubr.msk.f32.vlgmr.msra.gmra.mrb[10].mxu1 %vm501_vm2, %v1098_v27  ;;  %1768 = vmatpush3.bf16.msra.mxu0 %v1767_v7  ;;  %v1785_v27 = vpack.c.bf16 %v1406_v26, %v1405_v25 }
 0x4c3   : > { %1699 = vmatprep.mubr.msk.f32.mxu1 %vm1935_vm1, %v1936_v13  ;;  %1756 = vmatpush3.bf16.msra.mxu1 %v1755_v32 }
 0x4c4   : > { %1757 = vmatprep.subr.bf16.mxu1 %v1934_v10  ;;  %1769 = vmatprep.subr.bf16.mxu0 %v1934_v10 }
 0x4c7   : > { %1759 = vmatpush3.bf16.msra.mxu1 %v1758_v35 }
 0x4c8   : > { %1760 = vmatprep.subr.bf16.mxu1 %v1934_v10 }
 0x584   : > { %v660_v28 = vpop.f32.mrb[4].mxu1 }
 0x585   : > { %664 = vst.msk [vmem:[#allocation2] sm:$0xff] %vm501_vm2, %v660_v28  ;;  %v1660_v29 = vpop.f32.mrb[5].mxu1  ;;  %v1407_v28 = vld [vmem:[%s2330_s9 + $0x70] sm:$0xff] }
 0x586   : > { %v1408_v29 = vld [vmem:[%s2330_s9 + $0x78] sm:$0xff] }
 0x587   : > { %v1788_v30 = vpack.c.bf16 %v1408_v29, %v1407_v28 }
 0x58d   : > { %v827_v36 = vpop.f32.mrb[6].mxu1 }
 0x58e   : > { %832 = vrot.lane.b32.xlu0 %v827_v36, %s1948_s24  ;;  %v1670_v37 = vpop.f32.mrb[7].mxu1 }
 0x591   : > { %v999_v38 = vpop.f32.mrb[8].mxu1 }
 0x592   : > { %1004 = vrot.lane.b32.xlu1 %v999_v38, %s1949_s25  ;;  %v1680_v39 = vpop.f32.mrb[9].mxu1  ;;  %s1589_s25 = sshll.u32 %s2033_s21, 7 }
 0x593   : > { %s2278_s14 = scalar_lea.hbm %s2332_s11, %s1589_s25 }
 0x595   : > { %v1171_v40 = vpop.f32.mrb[10].mxu1 }
 0x596   : > { %1176 = vrot.lane.b32.xlu0 %v1171_v40, %s1950_s29  ;;  %v1690_v41 = vpop.f32.mrb[11].mxu1  ;;  %s377_s29 = scalar_lea.vmem [#allocation3], %s1565_s16  ;;  %s1951_s16 = smov [#allocation3]  }
 0x597   : > { %s1502_s30 = sshll.u32 %s377_s29, 4  ;;  %s1874_s24 = sshll.u32 %s1951_s16, 4  ;;  %s2280_s30 = int_to_ptr.vmem [resolvable:$true] %s1502_s30  ;;  %s1875_s24 = int_to_ptr.vmem [resolvable:$false] %s1874_s24 }
 0x598   : > { %s1870_s21 = scalar_lea.vmem %s2280_s30, 128  ;;  %s1876_s0 = scalar_lea.vmem %s1875_s24, 256 }
 0x599   : > { %p1871_p11 = scmp.ne.s32.totalorder %s2280_s30, %s1870_s21  ;;  %p1877_p0 = scmp.lt.s32.totalorder %s2280_s30, %s1875_s24 }
 0x59a   : > { %p1878_p1 = scmp.lt.s32.totalorder %s1876_s0, %s1870_s21 }
 0x59b   : > { %p1872_p12 = pnand %p1871_p11, %p2050_p5 }
 0x59c   : > { %p1879_p2 = por %p1878_p1, %p1877_p0 }
 0x59d   : > { %p1873_p13 = pneg %p1872_p12 }
 0x59f   : > { %p1880_p3 = pnand %p1879_p2, %p1873_p13 }
 0x600   : > { %v833_v42 = vpop.permute.xlu0 %832 }
 0x601   : > { %836 = vst.msk [vmem:[#allocation2] sm:$0xff] %vm835_vm3, %v833_v42 }
 0x604   : > { %v1005_v43 = vpop.permute.xlu1 %1004 }
 0x605   : > { %1008 = vst.msk [vmem:[#allocation2] sm:$0xff] %vm1007_vm4, %v1005_v43 }
 0x608   : > { %v1177_v44 = vpop.permute.xlu0 %1176 }
 0x609   : > { %1180 = vst.msk [vmem:[#allocation2] sm:$0xff] %vm1179_vm5, %v1177_v44 }
 0x610   : > { %v1181_v45 = vld [vmem:[#allocation2] sm:$0xff] }
 0x611   : > { %1700 = vmatmul.mubr.msk.f32.vlgmr.msra.gmra.mrb[12].mxu1 %vm385_vm0, %v1181_v45 }
 0x612   : > { %1710 = vmatprep.mubr.msk.f32.mxu1 %vm1935_vm1, %v1936_v13 }
 0x6e4   : > { %v1262_v47 = vpop.f32.mrb[12].mxu1 }
 0x6e5   : > { %v1263_v48 = vadd.f32 %v1583_v46, %v1262_v47  ;;  %v1701_v49 = vpop.f32.mrb[13].mxu1 }
 0x6e7   : > { %v2189_v50 = vadd.f32 %v1263_v48, %v2065_v0  ;;  %v1283_v0 = vld [vmem:[%s2328_s7 + $0x8] sm:$0xff] }
 0x6e8   : > { %v1761_v57 = vpack.c.bf16 %v1283_v0, %v1282_v56 }
 0x6e9   : > { %v1267_v51 = vsel %vm385_vm0, %v2189_v50, 0.0 }
 0x6ea   : > { %1268 = vadd.xlane.f32.xlu1 %v1267_v51  ;;  %1762 = vmatpush3.bf16.msra.mxu1 %v1761_v57 }
 0x6eb   : > { %1763 = vmatprep.subr.bf16.mxu1 %v1934_v10 }
 0x6ee   : > { %1765 = vmatpush3.bf16.msra.mxu1 %v1764_v60 }
 0x777   : > { %v1269_v52 = vpop.xlane.xlu1 %1268 }
 0x778   : > { %v1270_v53 = vmul.f32 0.03125, %v1269_v52 }
 0x77a   : > { %v1271_v54 = vsub.f32 %v2189_v50, %v1270_v53 }
 0x77c   : > { %v1272_v55 = vmul.f32 %v1271_v54, %v1271_v54 }
 0x77e   : > { %v1273_v13 = vsel %vm385_vm0, %v1272_v55, 0.0 }
 0x77f   : > { %1274 = vadd.xlane.f32.xlu0 %v1273_v13 }
 0x80c   : > { %v1275_v61 = vpop.xlane.xlu0 %1274 }
 0x80d   : > { %v1276_v62 = vmul.f32 0.03125, %v1275_v61 }
 0x80f   : > { %v1277_v63 = vadd.f32 1e-05, %v1276_v62 }
 0x811   : > { %1864 = vrsqrt.f32 %v1277_v63 }
 0x81b   : > { %v1865_v1 = vpop.eup %1864 }
 0x81c   : > { %v1279_v2 = vmul.f32 %v1865_v1, %v1271_v54 }
 0x81e   : > { %v1280_v3 = vmul.f32 %v2094_v19, %v1279_v2  ;;  %v1395_v19 = vld [vmem:[%s2330_s9 + $0x10] sm:$0xff] }
 0x820   : > { %v1281_v4 = vadd.f32 %v2099_v21, %v1280_v3  ;;  %v1396_v21 = vld [vmem:[%s2330_s9 + $0x18] sm:$0xff] }
 0x821   : > { %v1770_v8 = vpack.c.bf16 %v1396_v21, %v1395_v19 }
 0x822   : > { %1711 = vmatmul.mubr.msk.f32.vlgmr.msra.gmra.mrb[14].mxu1 %vm385_vm0, %v1281_v4 }
 0x823   : > { %1771 = vmatpush3.bf16.msra.mxu0 %v1770_v8 }
 0x824   : > { %1772 = vmatprep.subr.bf16.mxu0 %v1934_v10 }
 0x827   : > { %1774 = vmatpush3.bf16.msra.mxu0 %v1773_v12 }
 0x828   : > { %1775 = vmatprep.subr.bf16.mxu0 %v1934_v10 }
 0x82b   : > { %1777 = vmatpush3.bf16.msra.mxu0 %v1776_v16 }
 0x82c   : > { %1778 = vmatprep.subr.bf16.mxu0 %v1934_v10 }
 0x82f   : > { %1780 = vmatpush3.bf16.msra.mxu0 %v1779_v20 }
 0x830   : > { %1781 = vmatprep.subr.bf16.mxu0 %v1934_v10 }
 0x833   : > { %1783 = vmatpush3.bf16.msra.mxu0 %v1782_v24 }
 0x834   : > { %1784 = vmatprep.subr.bf16.mxu0 %v1934_v10 }
 0x837   : > { %1786 = vmatpush3.bf16.msra.mxu0 %v1785_v27 }
 0x838   : > { %1787 = vmatprep.subr.bf16.mxu0 %v1934_v10 }
 0x83b   : > { %1789 = vmatpush3.bf16.msra.mxu0 %v1788_v30 }
 0x8f5   : > { %v1362_v32 = vpop.f32.mrb[14].mxu1 }
 0x8f6   : > { %v1363_v33 = vadd.f32 %v1585_v31, %v1362_v32  ;;  %v1712_v34 = vpop.f32.mrb[15].mxu1 }
 0x8f8   : > { %v1367_v35 = vmul.f32 0.70710677, %v1363_v33  ;;  %v1366_v56 = vmul.f32 0.5, %v1363_v33 }
 0x8fa   : > { %v1368_v36 = vand.u32 2147483647, %v1367_v35  ;;  %vm1388_vm6 = vcmp.lt.f32.partialorder %v1367_v35, 0.0 }
 0x8fc   : > { %v1369_v10 = vmul.f32 0.3275911, %v1368_v36  ;;  %v1382_v38 = vsub.f32 0.0, %v1368_v36 }
 0x8fe   : > { %v1370_v37 = vadd.f32 1.0, %v1369_v10  ;;  %v1383_v40 = vmul.f32 %v1382_v38, %v1368_v36 }
 0x900   : > { %1866 = vrcp.f32 %v1370_v37  ;;  %v1384_v43 = vmul.f32 1.442695, %v1383_v40 }
 0x902   : > { %1868 = vpow2.f32 %v1384_v43 }
 0x90a   : > { %v1867_v39 = vpop.eup %1866 }
 0x90b   : > { %v1373_v41 = vmul.f32 1.0614054, %v1867_v39 }
 0x90c   : > { %v1869_v52 = vpop.eup %1868 }
 0x90d   : > { %v1374_v42 = vadd.f32 -1.4531521, %v1373_v41 }
 0x90f   : > { %v1375_v44 = vmul.f32 %v1867_v39, %v1374_v42 }
 0x911   : > { %v1376_v45 = vadd.f32 1.4214138, %v1375_v44 }
 0x913   : > { %v1377_v46 = vmul.f32 %v1867_v39, %v1376_v45 }
 0x915   : > { %v1378_v47 = vadd.f32 -0.28449672, %v1377_v46 }
 0x917   : > { %v1379_v48 = vmul.f32 %v1867_v39, %v1378_v47 }
 0x919   : > { %v1380_v49 = vadd.f32 0.2548296, %v1379_v48 }
 0x91b   : > { %v1381_v51 = vmul.f32 %v1867_v39, %v1380_v49 }
 0x91d   : > { %v1386_v53 = vmul.f32 %v1869_v52, %v1381_v51 }
 0x91f   : > { %v1387_v54 = vsub.f32 1.0, %v1386_v53 }
 0x921   : > { %v1389_v55 = vsub.f32 0.0, %v1387_v54 }
 0x923   : > { %v1390_v13 = vsel %vm1388_vm6, %v1389_v55, %v1387_v54 }
 0x924   : > { %v1391_v0 = vadd.f32 1.0, %v1390_v13 }
 0x926   : > { %v1392_v57 = vmul.f32 %v1391_v0, %v1366_v56 }
 0x928   : > { %1746 = vmatmul.mubr.f32.vlgmr.msra.gmra.mrb[6].mxu0 %v1392_v57 }
 0x9fb   : > { %v1482_v59 = vpop.f32.mrb[6].mxu0 }
 0x9fc   : > { %v1483_v60 = vadd.f32 %v1587_v58, %v1482_v59  ;;  %v1747_v61 = vpop.f32.mrb[7].mxu0 }
 0x9fe   : > { %v1486_v62 = vadd.f32 %v1483_v60, %v2189_v50 }
 0xa00   : > { %1487 = vst.msk [vmem:[%s377_s29] sm:$0xff] %vm385_vm0, %v1486_v62 }
 0xa01   : > { %1883 = shalt.err (!%p1880_p3)
}
 0xa02   : > { %s1884_s15 = scalar_lea.hbm %s2278_s14, 128  ;;  %s1888_s12 = scalar_lea.hbm %s2332_s11, 256 }
 0xa03   : > { %p1885_p4 = scmp.ne.s32.totalorder %s2278_s14, %s1884_s15  ;;  %p1889_p9 = scmp.lt.u32.totalorder %s2278_s14, %s2332_s11 }
 0xa04   : > { %p1890_p10 = scmp.lt.u32.totalorder %s1888_s12, %s1884_s15  ;;  %p1892_p12 = scmp.lt.u32.totalorder %s1884_s15, %s2278_s14 }
 0xa05   : > { %p1886_p7 = pnand %p1885_p4, %p2050_p5 }
 0xa06   : > { %p1891_p11 = por %p1890_p10, %p1889_p9 }
 0xa07   : > { %p1887_p8 = pneg %p1886_p7 }
 0xa08   : > { %p1893_p13 = por %p1892_p12, %p1891_p11 }
 0xa0a   : > { %p1894_p0 = pnand %p1893_p13, %p1887_p8 }
 0xa0c   : > { %1897 = shalt.err (!%p1894_p0)
}
 0xa0d   : > { %1790 = dma.vmem_to_hbm [thread:$0]  (%p2050_p5), %s2280_s30, 128, %s2278_s14, %s1489_s22  }
 0xa0e PF: > { %p1796_p1 = scmp.ge.s32.totalorder %s1932_s20, 2  ;;  %s1514_s0 = sand.u32 1, %s1920_s17  }
 0xa0f   : > { %s1515_s21 = scalar_lea.sflag [#allocation4], %s1514_s0 }
 0xa10   : > { %p1793_p2 = pnand %p1796_p1, %p2054_p6 }
 0xa12   : > { %1915 = dma.done.wait (!%p1793_p2), %s1515_s21, 128  }
 0xa13   : > { %1917 = vsyncadd (!%p1793_p2), %s1515_s21, 4294967168  ;;  %p21_p3 = scmp.ge.s32.totalorder %s2037_s23, 4   ;;  %s2337_s17 = smov %s1924_s18 }
 0xa14   : > { %s2338_s18 = smov %s1928_s19  ;;  %s2339_s19 = smov %s2048_s26 }
 0xa15   : > { %s2340_s20 = smov %s2037_s23  ;;  %23 = sbr.rel (!%p21_p3) target bundleno = 5 (0x5), region = 99 }
 0xa1c   :  { %1520 = vsyncpa [#allocation4], 1 }
 0xa1d   :  { %1522 = vsyncpa [#allocation4 + $0x1], 1 }

</bundles_post_ra>
